<compile_context>
chip_gen: v7x
topology: tpu7x:2x2x1
jax: 0.10.0
libtpu: 0.0.40
codegen_flags: <defaults>
</compile_context>

<pallas_src>
import numpy as np
import jax
import jax.numpy as jnp
from jax import lax
from jax.experimental import pallas as pl
from jax.experimental.pallas import tpu as pltpu

MASK_FILL = -1000000.0  # value torch assigns to masked timesteps


def _round_up(a, m):
    return (a + m - 1) // m * m


def _maxpool_decoding_kernel(mask_sref, x_ref, w_ref, b_ref, out_ref):
    # mask_sref: (b, n) int32 in SMEM (scalar-prefetched; nonzero = padded timestep)
    # x_ref:     (n, c, thw) input slab (batch dim squeezed), f32 or bf16
    # w_ref:     (K, c) f32   b_ref: (K, 1) f32   out_ref: (K, thw) f32
    bi = pl.program_id(0)
    n, c, thw = x_ref.shape

    def step(t, acc):
        is_pad = mask_sref[bi, t] != 0                         # scalar test from SMEM
        x_t = x_ref[t].astype(jnp.float32)                     # (c, thw), one timestep slab
        x_t = jnp.where(is_pad, jnp.float32(MASK_FILL), x_t)   # masked_fill
        return jnp.maximum(acc, x_t)

    acc0 = jnp.full((c, thw), -jnp.inf, dtype=jnp.float32)
    xmax = lax.fori_loop(0, n, step, acc0, unroll=True)        # temporal max, no (n,c,thw) temp

    out = jnp.dot(w_ref[...], xmax,
                  preferred_element_type=jnp.float32)          # (K, thw) on the MXU
    out_ref[...] = (out + b_ref[...]).astype(out_ref.dtype)    # single lane-dense store


def max_pool_decoding(x, mask, weight, bias, *, x_block_budget_bytes=6 * 1024 * 1024):
    """x: (b, n, c, h, w) f32/bf16; mask: (b, n) bool (True = padded timestep);
    weight: (num_classes, c); bias: (num_classes,). Returns (b, h, w, num_classes) f32."""
    b, n, c, h, w_sp = x.shape
    num_classes = weight.shape[0]
    hw = h * w_sp
    x_itemsize = jnp.dtype(x.dtype).itemsize

    # Spatial (lane) tile: multiple of 128, sized so one x block stays <= the budget
    # (Pallas double-buffers it).  No padding of x: the grid uses cdiv and the ragged
    # last block is masked on store.
    bytes_per_col = n * c * x_itemsize
    thw = max(128, (x_block_budget_bytes // bytes_per_col) // 128 * 128)
    thw = min(thw, _round_up(hw, 128))
    # v7x megacore: make sure there are at least 2 grid steps when possible.
    if b * pl.cdiv(hw, thw) < 2 and hw > 128:
        thw = max(128, _round_up((hw + 1) // 2, 128))
    n_hw_tiles = pl.cdiv(hw, thw)

    xr = x.reshape(b, n, c, hw)                                # free reshape, native layout
    mask_i32 = mask.astype(jnp.int32)                          # (b, n) -> SMEM scalar prefetch
    w2 = weight.astype(jnp.float32)                            # (K, c) torch layout, no transpose
    b2 = bias.astype(jnp.float32).reshape(num_classes, 1)      # (K, 1)

    # Explicit VMEM budget: double-buffered x + out blocks, resident W/bias, slack.
    x_block = n * c * thw * x_itemsize
    out_block = _round_up(num_classes, 8) * thw * 4
    w_bytes = _round_up(num_classes, 8) * _round_up(c, 128) * 4
    b_bytes = _round_up(num_classes, 8) * 128 * 4
    vmem_limit = int(max(32 * 1024 * 1024,
                         2 * x_block + 2 * out_block + w_bytes + b_bytes + (2 << 20)))

    cost = pl.CostEstimate(
        flops=2 * b * num_classes * c * hw,
        transcendentals=0,
        bytes_accessed=(b * n * c * hw * x_itemsize + b * num_classes * hw * 4
                        + num_classes * c * 4 + num_classes * 4 + b * n * 4),
    )

    out = pl.pallas_call(
        _maxpool_decoding_kernel,
        out_shape=jax.ShapeDtypeStruct((b, num_classes, hw), jnp.float32),
        grid_spec=pltpu.PrefetchScalarGridSpec(
            num_scalar_prefetch=1,                             # the (b, n) mask -> SMEM
            grid=(b, n_hw_tiles),
            in_specs=[
                pl.BlockSpec((pl.Squeezed(), n, c, thw),
                             lambda bi, j, m_ref: (bi, 0, 0, j)),          # x slab
                pl.BlockSpec((num_classes, c), lambda bi, j, m_ref: (0, 0)),  # W (resident)
                pl.BlockSpec((num_classes, 1), lambda bi, j, m_ref: (0, 0)),  # bias
            ],
            out_specs=pl.BlockSpec((pl.Squeezed(), num_classes, thw),
                                   lambda bi, j, m_ref: (bi, 0, j)),
        ),
        compiler_params=pltpu.CompilerParams(
            dimension_semantics=("parallel", "parallel"),
            vmem_limit_bytes=vmem_limit),
        cost_estimate=cost,
    )(mask_i32, xr, w2, b2)

    out = out.reshape(b, num_classes, h, w_sp)
    # NHWC required by the module; keep the transpose in the wrapper (an (hw, K) store
    # with K < 128 lanes inside the kernel would hit masked partial stores).
    return jnp.transpose(out, (0, 2, 3, 1))


def reference(x, mask, weight, bias):
    """Pure-JAX mirror of the PyTorch forward (for correctness check)."""
    xm = jnp.where(mask[:, :, None, None, None], MASK_FILL, x)
    xmax = jnp.max(xm, axis=1)                                 # (b, c, h, w)
    xr = jnp.transpose(xmax, (0, 2, 3, 1))                     # (b, h, w, c)
    return jnp.einsum('bhwc,kc->bhwk', xr, weight,
                      precision=jax.lax.Precision.HIGHEST) + bias


if __name__ == "__main__":
    master_key = jax.random.PRNGKey(0)

    def run_case(b, n, c, h, w, num_classes, x_dtype, key):
        kx, kw, kb = jax.random.split(key, 3)
        x = jax.random.normal(kx, (b, n, c, h, w), jnp.float32).astype(x_dtype)
        lens = (jnp.arange(b) % n) + (n // 2)                  # deterministic valid lengths
        mask = jnp.arange(n)[None, :] >= lens[:, None]         # (b, n) bool, True = padded

        weight = jax.random.normal(kw, (num_classes, c), jnp.float32) / np.sqrt(c)
        bias = 0.1 * jax.random.normal(kb, (num_classes,), jnp.float32)

        out = jax.block_until_ready(max_pool_decoding(x, mask, weight, bias))
        ref = reference(x.astype(jnp.float32), mask, weight, bias)
        assert out.shape == (b, h, w, num_classes)
        np.testing.assert_allclose(np.asarray(out), np.asarray(ref),
                                   rtol=1e-4, atol=1e-4)

    k1, k2, k3 = jax.random.split(master_key, 3)
    run_case(2, 8, 32, 16, 16, 6, jnp.float32, k1)    # aligned spatial (hw = 256)
    run_case(2, 8, 32, 15, 13, 6, jnp.float32, k2)    # ragged spatial (hw = 195, masked tail)
    run_case(1, 6, 32, 16, 16, 6, jnp.bfloat16, k3)   # bf16 input, b=1 (tile-split path)

    print("KERNEL_OK")
</pallas_src>

<mosaic_0001>
module attributes {stable_mosaic.version = 11 : i64} {
  func.func @_maxpool_decoding_kernel(%arg0: i32, %arg1: i32, %arg2: memref<2x8xi32, #tpu.memory_space<smem>>, %arg3: memref<1x8x32x256xf32, #tpu.memory_space<vmem>>, %arg4: memref<6x32xf32, #tpu.memory_space<vmem>>, %arg5: memref<6x1xf32, #tpu.memory_space<vmem>>, %arg6: memref<1x6x256xf32, #tpu.memory_space<vmem>>) attributes {dimension_semantics = [#tpu.dimension_semantics<parallel>, #tpu.dimension_semantics<parallel>], iteration_bounds = array<i64: 2, 1>, scalar_prefetch = 1 : i64, scratch_operands = 0 : i64, tpu.core_type = #tpu.core_type<tc>, window_params = [{transform_indices = @transform_0, window_bounds = array<i64: 1, 8, 32, 256>}, {pipeline_mode = #tpu.pipeline_mode<synchronous>, transform_indices = @transform_1, window_bounds = array<i64: 6, 32>}, {pipeline_mode = #tpu.pipeline_mode<synchronous>, transform_indices = @transform_2, window_bounds = array<i64: 6, 1>}, {transform_indices = @transform_3, window_bounds = array<i64: 1, 6, 256>}]} {
    %cst = arith.constant 0xFF800000 : f32
    %0 = vector.broadcast %cst : f32 to vector<32x256xf32>
    %c0_i32 = arith.constant 0 : i32
    %1 = arith.index_cast %arg0 : i32 to index
    %2 = arith.index_cast %c0_i32 : i32 to index
    %3 = memref.load %arg2[%1, %2] : memref<2x8xi32, #tpu.memory_space<smem>>
    %c0_i32_0 = arith.constant 0 : i32
    %4 = arith.cmpi ne, %3, %c0_i32_0 : i32
    %c0 = arith.constant 0 : index
    %5 = arith.index_cast %c0_i32 : i32 to index
    %c0_1 = arith.constant 0 : index
    %c0_2 = arith.constant 0 : index
    %6 = vector.load %arg3[%c0, %5, %c0_1, %c0_2] : memref<1x8x32x256xf32, #tpu.memory_space<vmem>>, vector<1x1x32x256xf32>
    %7 = vector.shape_cast %6 : vector<1x1x32x256xf32> to vector<32x256xf32>
    %cst_3 = arith.constant -1.000000e+06 : f32
    %8 = vector.broadcast %cst_3 : f32 to vector<32x256xf32>
    %9 = arith.select %4, %8, %7 : vector<32x256xf32>
    %10 = arith.maximumf %0, %9 : vector<32x256xf32>
    %c1_i32 = arith.constant 1 : i32
    %11 = arith.index_cast %arg0 : i32 to index
    %12 = arith.index_cast %c1_i32 : i32 to index
    %13 = memref.load %arg2[%11, %12] : memref<2x8xi32, #tpu.memory_space<smem>>
    %c0_i32_4 = arith.constant 0 : i32
    %14 = arith.cmpi ne, %13, %c0_i32_4 : i32
    %c0_5 = arith.constant 0 : index
    %15 = arith.index_cast %c1_i32 : i32 to index
    %c0_6 = arith.constant 0 : index
    %c0_7 = arith.constant 0 : index
    %16 = vector.load %arg3[%c0_5, %15, %c0_6, %c0_7] : memref<1x8x32x256xf32, #tpu.memory_space<vmem>>, vector<1x1x32x256xf32>
    %17 = vector.shape_cast %16 : vector<1x1x32x256xf32> to vector<32x256xf32>
    %cst_8 = arith.constant -1.000000e+06 : f32
    %18 = vector.broadcast %cst_8 : f32 to vector<32x256xf32>
    %19 = arith.select %14, %18, %17 : vector<32x256xf32>
    %20 = arith.maximumf %10, %19 : vector<32x256xf32>
    %c2_i32 = arith.constant 2 : i32
    %21 = arith.index_cast %arg0 : i32 to index
    %22 = arith.index_cast %c2_i32 : i32 to index
    %23 = memref.load %arg2[%21, %22] : memref<2x8xi32, #tpu.memory_space<smem>>
    %c0_i32_9 = arith.constant 0 : i32
    %24 = arith.cmpi ne, %23, %c0_i32_9 : i32
    %c0_10 = arith.constant 0 : index
    %25 = arith.index_cast %c2_i32 : i32 to index
    %c0_11 = arith.constant 0 : index
    %c0_12 = arith.constant 0 : index
    %26 = vector.load %arg3[%c0_10, %25, %c0_11, %c0_12] : memref<1x8x32x256xf32, #tpu.memory_space<vmem>>, vector<1x1x32x256xf32>
    %27 = vector.shape_cast %26 : vector<1x1x32x256xf32> to vector<32x256xf32>
    %cst_13 = arith.constant -1.000000e+06 : f32
    %28 = vector.broadcast %cst_13 : f32 to vector<32x256xf32>
    %29 = arith.select %24, %28, %27 : vector<32x256xf32>
    %30 = arith.maximumf %20, %29 : vector<32x256xf32>
    %c3_i32 = arith.constant 3 : i32
    %31 = arith.index_cast %arg0 : i32 to index
    %32 = arith.index_cast %c3_i32 : i32 to index
    %33 = memref.load %arg2[%31, %32] : memref<2x8xi32, #tpu.memory_space<smem>>
    %c0_i32_14 = arith.constant 0 : i32
    %34 = arith.cmpi ne, %33, %c0_i32_14 : i32
    %c0_15 = arith.constant 0 : index
    %35 = arith.index_cast %c3_i32 : i32 to index
    %c0_16 = arith.constant 0 : index
    %c0_17 = arith.constant 0 : index
    %36 = vector.load %arg3[%c0_15, %35, %c0_16, %c0_17] : memref<1x8x32x256xf32, #tpu.memory_space<vmem>>, vector<1x1x32x256xf32>
    %37 = vector.shape_cast %36 : vector<1x1x32x256xf32> to vector<32x256xf32>
    %cst_18 = arith.constant -1.000000e+06 : f32
    %38 = vector.broadcast %cst_18 : f32 to vector<32x256xf32>
    %39 = arith.select %34, %38, %37 : vector<32x256xf32>
    %40 = arith.maximumf %30, %39 : vector<32x256xf32>
    %c4_i32 = arith.constant 4 : i32
    %41 = arith.index_cast %arg0 : i32 to index
    %42 = arith.index_cast %c4_i32 : i32 to index
    %43 = memref.load %arg2[%41, %42] : memref<2x8xi32, #tpu.memory_space<smem>>
    %c0_i32_19 = arith.constant 0 : i32
    %44 = arith.cmpi ne, %43, %c0_i32_19 : i32
    %c0_20 = arith.constant 0 : index
    %45 = arith.index_cast %c4_i32 : i32 to index
    %c0_21 = arith.constant 0 : index
    %c0_22 = arith.constant 0 : index
    %46 = vector.load %arg3[%c0_20, %45, %c0_21, %c0_22] : memref<1x8x32x256xf32, #tpu.memory_space<vmem>>, vector<1x1x32x256xf32>
    %47 = vector.shape_cast %46 : vector<1x1x32x256xf32> to vector<32x256xf32>
    %cst_23 = arith.constant -1.000000e+06 : f32
    %48 = vector.broadcast %cst_23 : f32 to vector<32x256xf32>
    %49 = arith.select %44, %48, %47 : vector<32x256xf32>
    %50 = arith.maximumf %40, %49 : vector<32x256xf32>
    %c5_i32 = arith.constant 5 : i32
    %51 = arith.index_cast %arg0 : i32 to index
    %52 = arith.index_cast %c5_i32 : i32 to index
    %53 = memref.load %arg2[%51, %52] : memref<2x8xi32, #tpu.memory_space<smem>>
    %c0_i32_24 = arith.constant 0 : i32
    %54 = arith.cmpi ne, %53, %c0_i32_24 : i32
    %c0_25 = arith.constant 0 : index
    %55 = arith.index_cast %c5_i32 : i32 to index
    %c0_26 = arith.constant 0 : index
    %c0_27 = arith.constant 0 : index
    %56 = vector.load %arg3[%c0_25, %55, %c0_26, %c0_27] : memref<1x8x32x256xf32, #tpu.memory_space<vmem>>, vector<1x1x32x256xf32>
    %57 = vector.shape_cast %56 : vector<1x1x32x256xf32> to vector<32x256xf32>
    %cst_28 = arith.constant -1.000000e+06 : f32
    %58 = vector.broadcast %cst_28 : f32 to vector<32x256xf32>
    %59 = arith.select %54, %58, %57 : vector<32x256xf32>
    %60 = arith.maximumf %50, %59 : vector<32x256xf32>
    %c6_i32 = arith.constant 6 : i32
    %61 = arith.index_cast %arg0 : i32 to index
    %62 = arith.index_cast %c6_i32 : i32 to index
    %63 = memref.load %arg2[%61, %62] : memref<2x8xi32, #tpu.memory_space<smem>>
    %c0_i32_29 = arith.constant 0 : i32
    %64 = arith.cmpi ne, %63, %c0_i32_29 : i32
    %c0_30 = arith.constant 0 : index
    %65 = arith.index_cast %c6_i32 : i32 to index
    %c0_31 = arith.constant 0 : index
    %c0_32 = arith.constant 0 : index
    %66 = vector.load %arg3[%c0_30, %65, %c0_31, %c0_32] : memref<1x8x32x256xf32, #tpu.memory_space<vmem>>, vector<1x1x32x256xf32>
    %67 = vector.shape_cast %66 : vector<1x1x32x256xf32> to vector<32x256xf32>
    %cst_33 = arith.constant -1.000000e+06 : f32
    %68 = vector.broadcast %cst_33 : f32 to vector<32x256xf32>
    %69 = arith.select %64, %68, %67 : vector<32x256xf32>
    %70 = arith.maximumf %60, %69 : vector<32x256xf32>
    %c7_i32 = arith.constant 7 : i32
    %71 = arith.index_cast %arg0 : i32 to index
    %72 = arith.index_cast %c7_i32 : i32 to index
    %73 = memref.load %arg2[%71, %72] : memref<2x8xi32, #tpu.memory_space<smem>>
    %c0_i32_34 = arith.constant 0 : i32
    %74 = arith.cmpi ne, %73, %c0_i32_34 : i32
    %c0_35 = arith.constant 0 : index
    %75 = arith.index_cast %c7_i32 : i32 to index
    %c0_36 = arith.constant 0 : index
    %c0_37 = arith.constant 0 : index
    %76 = vector.load %arg3[%c0_35, %75, %c0_36, %c0_37] : memref<1x8x32x256xf32, #tpu.memory_space<vmem>>, vector<1x1x32x256xf32>
    %77 = vector.shape_cast %76 : vector<1x1x32x256xf32> to vector<32x256xf32>
    %cst_38 = arith.constant -1.000000e+06 : f32
    %78 = vector.broadcast %cst_38 : f32 to vector<32x256xf32>
    %79 = arith.select %74, %78, %77 : vector<32x256xf32>
    %80 = arith.maximumf %70, %79 : vector<32x256xf32>
    %c8_i32 = arith.constant 8 : i32
    %c0_39 = arith.constant 0 : index
    %c0_40 = arith.constant 0 : index
    %81 = vector.load %arg4[%c0_39, %c0_40] : memref<6x32xf32, #tpu.memory_space<vmem>>, vector<6x32xf32>
    %cst_41 = arith.constant dense<0.000000e+00> : vector<6x256xf32>
    %82 = tpu.matmul %81, %80, %cst_41 {dimension_numbers = #tpu.dot_dimension_numbers<[1], [0], [0], [1], [0, 0, 1, 1], [], []>} : vector<6x32xf32>, vector<32x256xf32>, vector<6x256xf32> -> vector<6x256xf32>
    %c0_42 = arith.constant 0 : index
    %c0_43 = arith.constant 0 : index
    %83 = vector.load %arg5[%c0_42, %c0_43] : memref<6x1xf32, #tpu.memory_space<vmem>>, vector<6x1xf32>
    %84 = vector.broadcast %83 : vector<6x1xf32> to vector<6x256xf32>
    %85 = arith.addf %82, %84 : vector<6x256xf32>
    %c0_44 = arith.constant 0 : index
    %c0_45 = arith.constant 0 : index
    %c0_46 = arith.constant 0 : index
    %86 = vector.load %arg6[%c0_44, %c0_45, %c0_46] : memref<1x6x256xf32, #tpu.memory_space<vmem>>, vector<1x6x256xf32>
    %87 = vector.shape_cast %86 : vector<1x6x256xf32> to vector<6x256xf32>
    %88 = vector.shape_cast %85 : vector<6x256xf32> to vector<1x6x256xf32>
    tpu.vector_store %arg6[%c0_44, %c0_45, %c0_46], %88 {strides = array<i32>} : memref<1x6x256xf32, #tpu.memory_space<vmem>>, vector<1x6x256xf32>,
    return
  }
  func.func @transform_0(%arg0: i32, %arg1: i32, %arg2: memref<2x8xi32, #tpu.memory_space<smem>>) -> (i32, i32, i32, i32) {
    %c0_i32 = arith.constant 0 : i32
    %c0_i32_0 = arith.constant 0 : i32
    %c0_i32_1 = arith.constant 0 : i32
    return %arg0, %c0_i32, %c0_i32_0, %arg1 : i32, i32, i32, i32
  }
  func.func @transform_1(%arg0: i32, %arg1: i32, %arg2: memref<2x8xi32, #tpu.memory_space<smem>>) -> (i32, i32) {
    %c0_i32 = arith.constant 0 : i32
    %c0_i32_0 = arith.constant 0 : i32
    %c0_i32_1 = arith.constant 0 : i32
    return %c0_i32, %c0_i32_0 : i32, i32
  }
  func.func @transform_2(%arg0: i32, %arg1: i32, %arg2: memref<2x8xi32, #tpu.memory_space<smem>>) -> (i32, i32) {
    %c0_i32 = arith.constant 0 : i32
    %c0_i32_0 = arith.constant 0 : i32
    %c0_i32_1 = arith.constant 0 : i32
    return %c0_i32, %c0_i32_0 : i32, i32
  }
  func.func @transform_3(%arg0: i32, %arg1: i32, %arg2: memref<2x8xi32, #tpu.memory_space<smem>>) -> (i32, i32, i32) {
    %c0_i32 = arith.constant 0 : i32
    %c0_i32_0 = arith.constant 0 : i32
    return %arg0, %c0_i32, %arg1 : i32, i32, i32
  }
}

</mosaic_0001>

<bundles_post_ra>
// kernel: tpu_custom_call.1
= control target key start
LH: loop header
LB: loop body
LE: loop exit
PB: predicated region body
PF: predicated region fallthrough
CT: control target
= control target key end

     0   :  { %s1313_s0 = inlined_call_operand.vmem [shape: s32[2,8], index: 0, kind: input, shape index: {}]   ;;  %s1314_s1 = inlined_call_operand.hbm [shape: f32[2,8,32,256], index: 1, kind: input, shape index: {}]   ;;  %s1315_s2 = inlined_call_operand.vmem [shape: f32[6,32], index: 2, kind: input, shape index: {}]   ;;  %s1316_s3 = inlined_call_operand.vmem [shape: f32[6,1], index: 3, kind: input, shape index: {}]   ;;  %s1317_s4 = inlined_call_operand.vmem [shape: f32[2,6,256], index: 4, kind: output, shape index: {}]  }
   0x1   :  { %s9_s17 = sshll.u32 %s1313_s0, 4  ;;  %s10_s17 = int_to_ptr.vmem [resolvable:$true] %s9_s17 }
   0x2   :  { %s786_s18 = scalar_lea.vmem %s10_s17, 32  ;;  %p791_p1 = scmp.lt.s32.totalorder %s10_s17, %s10_s17 }
   0x3   :  { %p787_p0 = scmp.ne.s32.totalorder %s10_s17, %s786_s18  ;;  %p792_p2 = scmp.lt.s32.totalorder %s786_s18, %s786_s18 }
   0x5   :  { %p793_p3 = por %p792_p2, %p791_p1 }
   0x7   :  { %p794_p4 = pnand %p793_p3, %p787_p0 }
   0x9   :  { %797 = shalt.err (!%p794_p4)  }
   0xa   :  { %s882_s19 = smov [#allocation3]  }
   0xb   :  { %12 = dma.vmem_to_smem %s10_s17, 32, %s882_s19, [#allocation2] }
   0xc   :  { %852 = dma.done.wait [#allocation2], 32 }
   0xd   :  { %853 = vsyncadd [#allocation2], 4294967264 }
   0xe   :  { %14 = sfence }
   0xf   :  { %15 = vsyncpa [#allocation5], 0 }
  0x10   :  { %17 = vsyncpa [#allocation5 + $0x1], 0  ;;  %s916_s20 = smov 0   ;;  %s918_s21 = smov 0  }
  0x11   :  { %s920_s0 = smov 0   ;;  %s922_s22 = smov 0  }
  0x12   :  { %s924_s23 = smov 0   ;;  %s926_s24 = smov 0  }
  0x13 LB: > { %s644_s25 = sadd.s32 4294967295, %s880_s24   ;;  %s35_s26 = sadd.s32 1, %s876_s23  ;;  %s880_s24 = sphi %s926_s24, %s23_s24   ;;  %s876_s23 = sphi %s924_s23, %s1341_s23   ;;  %s872_s22 = sphi %s922_s22, %s1340_s22   ;;  %s868_s0 = sphi %s920_s0, %s1339_s0   ;;  %s864_s21 = sphi %s918_s21, %s1338_s21   ;;  %s860_s20 = sphi %s916_s20, %s1337_s20  }
  0x14   : > { %p37_p5 = scmp.ge.s32.totalorder %s35_s26, 2  ;;  %s44_s27 = sadd.s32 1, %s868_s0 }
  0x15   : > { %p51_p6 = scmp.ne.s32.totalorder %s868_s0, %s864_s21  ;;  %p52_p7 = scmp.eq.s32.totalorder %s880_s24, 0 }
  0x16   : > { %s1343_s26 = smov (%p37_p5, %s35_s26), 0  ;;  %p57_p9 = scmp.ne.s32.totalorder %s864_s21, %s860_s20 }
  0x17   : > { %p952_p8 = por %p52_p7, %p51_p6  ;;  %s39_s29 = ssub.s32 %s876_s23, %s1343_s26 }
  0x18   : > { %p58_p10 = scmp.eq.s32.totalorder %s644_s25, 0  ;;  %p42_p11 = scmp.eq.s32.totalorder %s39_s29, 0 }
  0x19   : > { %p731_p13 = scmp.lt.s32.totalorder %s880_s24, 2  ;;  %s157_s6 = sand.u32 1, %s868_s0  }
  0x1a   : > { %p959_p12 = por %p58_p10, %p57_p9  ;;  %s715_s7 = sshll.u32 %s876_s23, 13 }
  0x1b   : > { %s965_s5 = scalar_select %p42_p11, %s868_s0, %s44_s27  }
  0x1c   : > { %s648_s8 = sshll.u32 %s157_s6, 9  ;;  %s972_s11 = scalar_lea.hbm %s1314_s1, %s715_s7 }
  0x1d   : > { %s161_s12 = scalar_lea.vmem [#allocation4], %s648_s8  ;;  %p976_p0 = pnand %p731_p13, %p952_p8 }
  0x1e   : > { %s170_s13 = sshll.u32 %s161_s12, 4  ;;  %s982_s15 = scalar_lea.sflag [#allocation5], %s157_s6  ;;  %s980_s13 = int_to_ptr.vmem [resolvable:$true] %s170_s13 }
  0x1f   : > { %s798_s16 = scalar_lea.hbm %s972_s11, 8192  ;;  %p800_p2 = pneg %p976_p0 }
  0x20   : > { %p799_p1 = scmp.ne.s32.totalorder %s972_s11, %s798_s16  ;;  %s803_s19 = scalar_lea.hbm %s1314_s1, 16384 }
  0x21   : > { %p804_p5 = scmp.lt.u32.totalorder %s972_s11, %s1314_s1  ;;  %p805_p6 = scmp.lt.u32.totalorder %s803_s19, %s798_s16 }
  0x22   : > { %p801_p3 = pnand %p800_p2, %p799_p1  ;;  %p807_p8 = scmp.lt.u32.totalorder %s798_s16, %s972_s11 }
  0x23   : > { %p806_p7 = por %p805_p6, %p804_p5 }
  0x24   : > { %p802_p4 = pneg %p801_p3 }
  0x25   : > { %p808_p9 = por %p807_p8, %p806_p7 }
  0x27   : > { %p809_p10 = pnand %p808_p9, %p802_p4 }
  0x29   : > { %812 = shalt.err (!%p809_p10)
}
  0x2a   : > { %s813_s27 = scalar_lea.vmem %s980_s13, 8192  ;;  %s883_s28 = smov [#allocation4]  }
  0x2b   : > { %p814_p11 = scmp.ne.s32.totalorder %s980_s13, %s813_s27  ;;  %s818_s29 = sshll.u32 %s883_s28, 4  ;;  %s819_s29 = int_to_ptr.vmem [resolvable:$false] %s818_s29 }
  0x2c   : > { %s820_s6 = scalar_lea.vmem %s819_s29, 16384  ;;  %p821_p3 = scmp.lt.s32.totalorder %s980_s13, %s819_s29 }
  0x2d   : > { %p816_p13 = pnand %p814_p11, %p800_p2  ;;  %p822_p5 = scmp.lt.s32.totalorder %s820_s6, %s813_s27 }
  0x2f   : > { %p817_p1 = pneg %p816_p13  ;;  %p823_p6 = por %p822_p5, %p821_p3 }
  0x31   : > { %p824_p7 = pnand %p823_p6, %p817_p1 }
  0x33   : > { %827 = shalt.err (!%p824_p7)
}
  0x34   : > { %s884_s7 = smov 256   ;;  %s885_s8 = smov 16  }
  0x35   : > { %730 = dma.hbm_to_vmem [thread:$0]  (!%p976_p0), %s972_s11, 8192, %s980_s13, %s982_s15, %s884_s7, %s884_s7, %s885_s8  }
  0x36   : > { %p651_p2 = scmp.ge.s32.totalorder %s880_s24, 1  ;;  %p178_p4 = scmp.lt.s32.totalorder %s880_s24, 3 }
  0x38   : > { %p179_p8 = pnand %p651_p2, %p178_p4 }
  0x39   : > { %s184_s9 = sand.u32 (!%p179_p8), 1, %s864_s21  }
  0x3a   : > { %182 = sbr.rel (%p179_p8) target bundleno = 341 (0x155), region = 32  ;;  %s652_s10 = sshll.u32 (!%p179_p8), %s184_s9, 9 }
  0x3b   : > { %s185_s12 = scalar_lea.sflag (!%p179_p8), [#allocation5], %s184_s9  ;;  %s1013_s16 = scalar_lea.vmem (!%p179_p8), [#allocation4], %s652_s10 }
  0x41   : > { %855 = dma.done.wait (%p959_p12), %s185_s12, 8192  }
  0x42   : > { %857 = vsyncadd (%p959_p12), %s185_s12, 4294959104  ;;  %s1020_s17 = sshll.u32 %s872_s22, 7  ;;  %v886_v0 = vmov 0.0   ;;  %v887_v1 = vmov 0   ;;  %v230_v2 = vld [vmem:[%s1013_s16 + $0x8] sm:$0xff]  ;;  %v232_v3 = vld [vmem:[%s1013_s16 + $0x18] sm:$0xff] }
  0x43   : > { %s227_s11 = sld [smem:[#allocation3 + %s1020_s17]]  ;;  %s248_s13 = sadd.s32 1, %s1020_s17  ;;  %540 = vmatprep.mubr.f32.mxu0 %v886_v0  ;;  %785 = vset.pattern.permute.xlu0 %v887_v1  ;;  %v657_v5 = vld [vmem:[%s1013_s16 + $0x48] sm:$0xff]  ;;  %v659_v6 = vld [vmem:[%s1013_s16 + $0x58] sm:$0xff]  ;;  %v229_v9 = vld [vmem:[%s1013_s16] sm:$0xff]  ;;  %vm472_vm8 = vcmask 261120  }
  0x44   : > { %s249_s30 = sld [smem:[#allocation3 + %s248_s13]]  ;;  %s279_s14 = sadd.s32 2, %s1020_s17  ;;  %v231_v10 = vld [vmem:[%s1013_s16 + $0x10] sm:$0xff]  ;;  %v665_v14 = vld [vmem:[%s1013_s16 + $0x88] sm:$0xff]  ;;  %v667_v15 = vld [vmem:[%s1013_s16 + $0x98] sm:$0xff] }
  0x45   : > { %s1025_s15 = sld [smem:[#allocation3 + %s279_s14]]  ;;  %s310_s18 = sadd.s32 3, %s1020_s17  ;;  %v673_v20 = vld [vmem:[%s1013_s16 + $0xc8] sm:$0xff]  ;;  %v675_v21 = vld [vmem:[%s1013_s16 + $0xd8] sm:$0xff]  ;;  %v656_v27 = vld [vmem:[%s1013_s16 + $0x40] sm:$0xff] }
  0x46   : > { %s1028_s19 = sld [smem:[#allocation3 + %s310_s18]]  ;;  %s341_s20 = sadd.s32 4, %s1020_s17  ;;  %v681_v24 = vld [vmem:[%s1013_s16 + $0x108] sm:$0xff]  ;;  %v683_v25 = vld [vmem:[%s1013_s16 + $0x118] sm:$0xff]  ;;  %v658_v28 = vld [vmem:[%s1013_s16 + $0x50] sm:$0xff] }
  0x47   : > { %s1031_s25 = sld [smem:[#allocation3 + %s341_s20]]  ;;  %s372_s27 = sadd.s32 5, %s1020_s17  ;;  %v664_v32 = vld [vmem:[%s1013_s16 + $0x80] sm:$0xff]  ;;  %v689_v37 = vld [vmem:[%s1013_s16 + $0x148] sm:$0xff]  ;;  %v691_v43 = vld [vmem:[%s1013_s16 + $0x158] sm:$0xff] }
  0x48   : > { %s1034_s28 = sld [smem:[#allocation3 + %s372_s27]]  ;;  %s403_s29 = sadd.s32 6, %s1020_s17  ;;  %v697_v45 = vld [vmem:[%s1013_s16 + $0x188] sm:$0xff]  ;;  %v699_v46 = vld [vmem:[%s1013_s16 + $0x198] sm:$0xff]  ;;  %v666_v53 = vld [vmem:[%s1013_s16 + $0x90] sm:$0xff] }
  0x49   : > { %p228_p12 = scmp.ne.s32.totalorder %s227_s11, 0  ;;  %s1037_s6 = sld [smem:[#allocation3 + %s403_s29]]  ;;  %v672_v54 = vld [vmem:[%s1013_s16 + $0xc0] sm:$0xff]  ;;  %v674_v59 = vld [vmem:[%s1013_s16 + $0xd0] sm:$0xff] }
  0x4a   : > { %p250_p0 = scmp.ne.s32.totalorder %s249_s30, 0  ;;  %s434_s7 = sadd.s32 7, %s1020_s17  ;;  %v680_v60 = vld [vmem:[%s1013_s16 + $0x100] sm:$0xff]  ;;  %v682_v61 = vld [vmem:[%s1013_s16 + $0x110] sm:$0xff] }
  0x4b   : > { %s237_s8 = scalar_select %p228_p12, 1, 0  ;;  %v686_v7 = vld [vmem:[%s1013_s16 + $0x130] sm:$0xff]  ;;  %v700_v35 = vld [vmem:[%s1013_s16 + $0x1a0] sm:$0xff] }
  0x4c   : > { %s260_s9 = scalar_select %p250_p0, 1, 0 }
  0x4d   : > { %v238_v4 = vstv %s237_s8  ;;  %p281_p9 = scmp.ne.s32.totalorder %s1025_s15, 0  ;;  %p312_p10 = scmp.ne.s32.totalorder %s1028_s19, 0 }
  0x4e   : > { %vm1046_vm0 = vcmp.eq.s32.totalorder %v238_v4, 1  ;;  %v261_v8 = vstv %s260_s9  ;;  %p343_p11 = scmp.ne.s32.totalorder %s1031_s25, 0  ;;  %p374_p13 = scmp.ne.s32.totalorder %s1034_s28, 0  ;;  %v465_v4 = vld [vmem:[%s1315_s2] sm:$0x3f] }
  0x4f   : > { %v241_v11 = vsel %vm1046_vm0, -1000000.0, %v230_v2  ;;  %v243_v12 = vsel %vm1046_vm0, -1000000.0, %v232_v3  ;;  %vm1058_vm1 = vcmp.eq.s32.totalorder %v261_v8, 1  ;;  %p405_p1 = scmp.ne.s32.totalorder %s1037_s6, 0 }
  0x50   : > { %v264_v16 = vsel %vm1058_vm1, -1000000.0, %v657_v5  ;;  %v266_v17 = vsel %vm1058_vm1, -1000000.0, %v659_v6  ;;  %s291_s10 = scalar_select %p281_p9, 1, 0 }
  0x51   : > { %v272_v18 = vmax.f32 %v241_v11, %v264_v16  ;;  %v274_v19 = vmax.f32 %v243_v12, %v266_v17  ;;  %s322_s12 = scalar_select %p312_p10, 1, 0  ;;  %v240_v22 = vsel %vm1046_vm0, -1000000.0, %v229_v9  ;;  %v242_v26 = vsel %vm1046_vm0, -1000000.0, %v231_v10 }
  0x52   : > { %v292_v23 = vstv %s291_s10  ;;  %s353_s11 = scalar_select %p343_p11, 1, 0  ;;  %v263_v31 = vsel %vm1058_vm1, -1000000.0, %v656_v27  ;;  %v265_v47 = vsel %vm1058_vm1, -1000000.0, %v658_v28 }
  0x53   : > { %vm1085_vm2 = vcmp.eq.s32.totalorder %v292_v23, 1  ;;  %v323_v30 = vstv %s322_s12  ;;  %s384_s13 = scalar_select %p374_p13, 1, 0  ;;  %v271_v48 = vmax.f32 %v240_v22, %v263_v31  ;;  %v273_v57 = vmax.f32 %v242_v26, %v265_v47  ;;  %v688_v2 = vld [vmem:[%s1013_s16 + $0x140] sm:$0xff]  ;;  %v690_v3 = vld [vmem:[%s1013_s16 + $0x150] sm:$0xff]  ;;  %v234_v28 = vld [vmem:[%s1013_s16 + $0x28] sm:$0xff] }
  0x54   : > { %v295_v33 = vsel %vm1085_vm2, -1000000.0, %v665_v14  ;;  %v297_v34 = vsel %vm1085_vm2, -1000000.0, %v667_v15  ;;  %vm1098_vm3 = vcmp.eq.s32.totalorder %v323_v30, 1  ;;  %v354_v36 = vstv %s353_s11  ;;  %s1105_s30 = sld [smem:[#allocation3 + %s434_s7]] }
  0x55   : > { %v303_v38 = vmax.f32 %v272_v18, %v295_v33  ;;  %v305_v39 = vmax.f32 %v274_v19, %v297_v34  ;;  %v326_v40 = vsel %vm1098_vm3, -1000000.0, %v673_v20  ;;  %v328_v41 = vsel %vm1098_vm3, -1000000.0, %v675_v21  ;;  %s415_s14 = scalar_select %p405_p1, 1, 0 }
  0x56   : > { %vm1113_vm4 = vcmp.eq.s32.totalorder %v354_v36, 1  ;;  %v385_v44 = vstv %s384_s13  ;;  %v294_v58 = vsel %vm1085_vm2, -1000000.0, %v664_v32  ;;  %v296_v5 = vsel %vm1085_vm2, -1000000.0, %v666_v53  ;;  %v705_v14 = vld [vmem:[%s1013_s16 + $0x1c8] sm:$0xff] }
  0x57   : > { %v334_v49 = vmax.f32 %v303_v38, %v326_v40  ;;  %v336_v50 = vmax.f32 %v305_v39, %v328_v41  ;;  %v357_v51 = vsel %vm1113_vm4, -1000000.0, %v681_v24  ;;  %v359_v52 = vsel %vm1113_vm4, -1000000.0, %v683_v25  ;;  %v707_v15 = vld [vmem:[%s1013_s16 + $0x1d8] sm:$0xff]  ;;  %v696_v16 = vld [vmem:[%s1013_s16 + $0x180] sm:$0xff] }
  0x58   : > { %vm1128_vm5 = vcmp.eq.s32.totalorder %v385_v44, 1  ;;  %v416_v56 = vstv %s415_s14  ;;  %v302_v6 = vmax.f32 %v271_v48, %v294_v58  ;;  %v325_v8 = vsel %vm1098_vm3, -1000000.0, %v672_v54  ;;  %v698_v17 = vld [vmem:[%s1013_s16 + $0x190] sm:$0xff]  ;;  %v704_v22 = vld [vmem:[%s1013_s16 + $0x1c0] sm:$0xff]  ;;  %v236_v34 = vld [vmem:[%s1013_s16 + $0x38] sm:$0xff] }
  0x59   : > { %v365_v62 = vmax.f32 %v334_v49, %v357_v51  ;;  %v367_v63 = vmax.f32 %v336_v50, %v359_v52  ;;  %v388_v0 = vsel %vm1128_vm5, -1000000.0, %v689_v37  ;;  %v390_v1 = vsel %vm1128_vm5, -1000000.0, %v691_v43  ;;  %v706_v27 = vld [vmem:[%s1013_s16 + $0x1d0] sm:$0xff]  ;;  %v661_v36 = vld [vmem:[%s1013_s16 + $0x68] sm:$0xff] }
  0x5a   : > { %vm1143_vm6 = vcmp.eq.s32.totalorder %v416_v56, 1  ;;  %p436_p3 = scmp.ne.s32.totalorder %s1105_s30, 0  ;;  %v304_v18 = vmax.f32 %v273_v57, %v296_v5  ;;  %v327_v19 = vsel %vm1098_vm3, -1000000.0, %v674_v59  ;;  %v333_v20 = vmax.f32 %v302_v6, %v325_v8  ;;  %v663_v37 = vld [vmem:[%s1013_s16 + $0x78] sm:$0xff]  ;;  %v669_v41 = vld [vmem:[%s1013_s16 + $0xa8] sm:$0xff] }
  0x5b   : > { %v396_v9 = vmax.f32 %v365_v62, %v388_v0  ;;  %v398_v10 = vmax.f32 %v367_v63, %v390_v1  ;;  %v419_v11 = vsel %vm1143_vm6, -1000000.0, %v697_v45  ;;  %v421_v12 = vsel %vm1143_vm6, -1000000.0, %v699_v46  ;;  %v671_v47 = vld [vmem:[%s1013_s16 + $0xb8] sm:$0xff]  ;;  %v677_v48 = vld [vmem:[%s1013_s16 + $0xe8] sm:$0xff] }
  0x5c   : > { %s446_s17 = scalar_select %p436_p3, 1, 0  ;;  %v356_v21 = vsel %vm1113_vm4, -1000000.0, %v680_v60  ;;  %v358_v25 = vsel %vm1113_vm4, -1000000.0, %v682_v61  ;;  %v335_v31 = vmax.f32 %v304_v18, %v327_v19 }
  0x5d   : > { %v427_v23 = vmax.f32 %v396_v9, %v419_v11  ;;  %v429_v24 = vmax.f32 %v398_v10, %v421_v12  ;;  %v387_v26 = vsel %vm1128_vm5, -1000000.0, %v688_v2  ;;  %v364_v32 = vmax.f32 %v333_v20, %v356_v21  ;;  %v679_v53 = vld [vmem:[%s1013_s16 + $0xf8] sm:$0xff]  ;;  %v685_v54 = vld [vmem:[%s1013_s16 + $0x128] sm:$0xff]  ;;  %v233_v21 = vld [vmem:[%s1013_s16 + $0x20] sm:$0xff]  ;;  %p217_p5 = scmp.lt.s32.totalorder %s872_s22, 1 }
  0x5e   : > { %v447_v30 = vstv %s446_s17  ;;  %v389_v33 = vsel %vm1128_vm5, -1000000.0, %v690_v3  ;;  %v418_v39 = vsel %vm1143_vm6, -1000000.0, %v696_v16  ;;  %v420_v40 = vsel %vm1143_vm6, -1000000.0, %v698_v17 }
  0x5f   : > { %vm1176_vm7 = vcmp.eq.s32.totalorder %v447_v30, 1  ;;  %v366_v45 = vmax.f32 %v335_v31, %v358_v25  ;;  %v395_v46 = vmax.f32 %v364_v32, %v387_v26  ;;  %v245_v58 = vsel %vm1046_vm0, -1000000.0, %v234_v28  ;;  %v687_v60 = vld [vmem:[%s1013_s16 + $0x138] sm:$0xff]  ;;  %v693_v61 = vld [vmem:[%s1013_s16 + $0x168] sm:$0xff]  ;;  %v662_v32 = vld [vmem:[%s1013_s16 + $0x70] sm:$0xff] }
  0x60   : > { %v450_v43 = vsel %vm1176_vm7, -1000000.0, %v705_v14  ;;  %v452_v44 = vsel %vm1176_vm7, -1000000.0, %v707_v15  ;;  %v449_v51 = vsel %vm1176_vm7, -1000000.0, %v704_v22 }
  0x61   : > { %v458_v49 = vmax.f32 %v427_v23, %v450_v43  ;;  %v460_v50 = vmax.f32 %v429_v24, %v452_v44  ;;  %v451_v52 = vsel %vm1176_vm7, -1000000.0, %v706_v27  ;;  %v397_v56 = vmax.f32 %v366_v45, %v389_v33  ;;  %v695_v62 = vld [vmem:[%s1013_s16 + $0x178] sm:$0xff]  ;;  %v701_v3 = vld [vmem:[%s1013_s16 + $0x1a8] sm:$0xff]  ;;  %v235_v22 = vld [vmem:[%s1013_s16 + $0x30] sm:$0xff]  ;;  %s1345_s22 = smov (!%p217_p5, %s872_s22), 1 }
  0x62   : > { %v426_v57 = vmax.f32 %v395_v46, %v418_v39  ;;  %v247_v59 = vsel %vm1046_vm0, -1000000.0, %v236_v34  ;;  %v268_v0 = vsel %vm1058_vm1, -1000000.0, %v661_v36  ;;  %v270_v1 = vsel %vm1058_vm1, -1000000.0, %v663_v37 }
  0x63   : > { %v717_v63 = vpack.c.bf16 %v460_v50, %v458_v49  ;;  %v299_v2 = vsel %vm1085_vm2, -1000000.0, %v669_v41  ;;  %v428_v5 = vmax.f32 %v397_v56, %v420_v40  ;;  %v276_v8 = vmax.f32 %v245_v58, %v268_v0  ;;  %v703_v10 = vld [vmem:[%s1013_s16 + $0x1b8] sm:$0xff]  ;;  %v709_v11 = vld [vmem:[%s1013_s16 + $0x1e8] sm:$0xff]  ;;  %v660_v23 = vld [vmem:[%s1013_s16 + $0x60] sm:$0xff]  ;;  %s716_s20 = sshll.u32 %s1345_s22, 4 }
  0x64   : > { %v457_v6 = vmax.f32 %v426_v57, %v449_v51  ;;  %v278_v9 = vmax.f32 %v247_v59, %v270_v1  ;;  %v711_v12 = vld [vmem:[%s1013_s16 + $0x1f8] sm:$0xff]  ;;  %v301_v14 = vsel %vm1085_vm2, -1000000.0, %v671_v47  ;;  %v330_v15 = vsel %vm1098_vm3, -1000000.0, %v677_v48  ;;  %v668_v33 = vld [vmem:[%s1013_s16 + $0xa0] sm:$0xff]  ;;  %s224_s28 = scalar_lea.vmem %s1317_s4, %s716_s20 }
  0x65   : > { %718 = vmatprep.subr.bf16.mxu0 %v717_v63  ;;  %v332_v16 = vsel %vm1098_vm3, -1000000.0, %v679_v53  ;;  %v459_v17 = vmax.f32 %v428_v5, %v451_v52  ;;  %v307_v18 = vmax.f32 %v276_v8, %v299_v2  ;;  %v361_v20 = vsel %vm1113_vm4, -1000000.0, %v685_v54  ;;  %v670_v34 = vld [vmem:[%s1013_s16 + $0xb0] sm:$0xff]  ;;  %v676_v45 = vld [vmem:[%s1013_s16 + $0xe0] sm:$0xff] }
  0x66   : > { %v309_v19 = vmax.f32 %v278_v9, %v301_v14  ;;  %v363_v24 = vsel %vm1113_vm4, -1000000.0, %v687_v60  ;;  %v392_v25 = vsel %vm1128_vm5, -1000000.0, %v693_v61  ;;  %v394_v26 = vsel %vm1128_vm5, -1000000.0, %v695_v62 }
  0x67   : > { %v719_v27 = vpack.c.bf16 %v459_v17, %v457_v6  ;;  %v338_v28 = vmax.f32 %v307_v18, %v330_v15  ;;  %v423_v31 = vsel %vm1143_vm6, -1000000.0, %v701_v3  ;;  %v425_v36 = vsel %vm1143_vm6, -1000000.0, %v703_v10  ;;  %v678_v46 = vld [vmem:[%s1013_s16 + $0xf0] sm:$0xff]  ;;  %v684_v54 = vld [vmem:[%s1013_s16 + $0x120] sm:$0xff] }
  0x68   : > { %v340_v30 = vmax.f32 %v309_v19, %v332_v16  ;;  %v454_v37 = vsel %vm1176_vm7, -1000000.0, %v709_v11  ;;  %v456_v39 = vsel %vm1176_vm7, -1000000.0, %v711_v12  ;;  %v244_v43 = vsel %vm1046_vm0, -1000000.0, %v233_v21 }
  0x69   : > { %720 = vmatpush1.bf16.msra.mxu0 %v719_v27  ;;  %v369_v40 = vmax.f32 %v338_v28, %v361_v20  ;;  %v246_v44 = vsel %vm1046_vm0, -1000000.0, %v235_v22  ;;  %v267_v47 = vsel %vm1058_vm1, -1000000.0, %v660_v23  ;;  %v269_v48 = vsel %vm1058_vm1, -1000000.0, %v662_v32 }
  0x6a   : > { %v371_v41 = vmax.f32 %v340_v30, %v363_v24  ;;  %v298_v49 = vsel %vm1085_vm2, -1000000.0, %v668_v33  ;;  %v275_v52 = vmax.f32 %v244_v43, %v267_v47  ;;  %v277_v53 = vmax.f32 %v246_v44, %v269_v48  ;;  %v692_v62 = vld [vmem:[%s1013_s16 + $0x160] sm:$0xff]  ;;  %v694_v63 = vld [vmem:[%s1013_s16 + $0x170] sm:$0xff] }
  0x6b   : > { %v400_v50 = vmax.f32 %v369_v40, %v392_v25  ;;  %v300_v56 = vsel %vm1085_vm2, -1000000.0, %v670_v34  ;;  %v329_v13 = vsel %vm1098_vm3, -1000000.0, %v676_v45  ;;  %v331_v57 = vsel %vm1098_vm3, -1000000.0, %v678_v46 }
  0x6c   : > { %v402_v51 = vmax.f32 %v371_v41, %v394_v26  ;;  %v306_v60 = vmax.f32 %v275_v52, %v298_v49  ;;  %v308_v61 = vmax.f32 %v277_v53, %v300_v56  ;;  %v360_v0 = vsel %vm1113_vm4, -1000000.0, %v684_v54  ;;  %v702_v6 = vld [vmem:[%s1013_s16 + $0x1b0] sm:$0xff]  ;;  %v466_v8 = vld [vmem:[%s1316_s3] sm:$0x3f] }
  0x6d   : > { %v431_v58 = vmax.f32 %v400_v50, %v423_v31  ;;  %v362_v29 = vsel %vm1113_vm4, -1000000.0, %v686_v7  ;;  %v391_v9 = vsel %vm1128_vm5, -1000000.0, %v692_v62  ;;  %v393_v10 = vsel %vm1128_vm5, -1000000.0, %v694_v63  ;;  %469 = vperm.xlu0 %785, %v466_v8  }
  0x6e   : > { %v433_v59 = vmax.f32 %v402_v51, %v425_v36  ;;  %v337_v3 = vmax.f32 %v306_v60, %v329_v13  ;;  %v339_v5 = vmax.f32 %v308_v61, %v331_v57  ;;  %v708_v14 = vld [vmem:[%s1013_s16 + $0x1e0] sm:$0xff]  ;;  %v710_v15 = vld [vmem:[%s1013_s16 + $0x1f0] sm:$0xff]  ;;  %v422_v16 = vsel %vm1143_vm6, -1000000.0, %v700_v35 }
  0x6f   : > { %v462_v1 = vmax.f32 %v431_v58, %v454_v37  ;;  %v424_v17 = vsel %vm1143_vm6, -1000000.0, %v702_v6  ;;  %v453_v55 = vsel %vm1176_vm7, -1000000.0, %v708_v14  ;;  %v455_v20 = vsel %vm1176_vm7, -1000000.0, %v710_v15 }
  0x70   : > { %v464_v2 = vmax.f32 %v433_v59, %v456_v39  ;;  %v368_v11 = vmax.f32 %v337_v3, %v360_v0  ;;  %v370_v12 = vmax.f32 %v339_v5, %v362_v29 }
  0x72   : > { %v721_v42 = vpack.c.bf16 %v464_v2, %v462_v1  ;;  %v399_v18 = vmax.f32 %v368_v11, %v391_v9  ;;  %v401_v19 = vmax.f32 %v370_v12, %v393_v10 }
  0x74   : > { %722 = vmatprep.subr.bf16.mxu0 %v721_v42  ;;  %v430_v21 = vmax.f32 %v399_v18, %v422_v16  ;;  %v432_v22 = vmax.f32 %v401_v19, %v424_v17 }
  0x76   : > { %v461_v23 = vmax.f32 %v430_v21, %v453_v55  ;;  %v463_v24 = vmax.f32 %v432_v22, %v455_v20 }
  0x78   : > { %v723_v25 = vpack.c.bf16 %v463_v24, %v461_v23 }
  0x7a   : > { %724 = vmatpush1.bf16.msra.mxu0 %v723_v25 }
  0x7d   : > { %712 = vmatmul.mubr.msk.f32.vlgmr.msra.gmra.mrb[0].mxu0 %vm472_vm8, %v465_v4 }
  0xec   : > { %v470_v26 = vpop.permute.xlu0 %469 }
 0x150   : > { %v542_v38 = vpop.f32.mrb[0].mxu0 }
 0x151   : > { %v543_v27 = vadd.f32 %v542_v38, %v470_v26  ;;  %v544_v28 = vpop.f32.mrb[1].mxu0 }
 0x152   : > { %v545_v30 = vadd.f32 %v544_v28, %v470_v26 }
 0x153   : > { %547 = vst [vmem:[%s224_s28] sm:$0x3f] %v543_v27 }
 0x154   : > { %548 = vst [vmem:[%s224_s28 + $0x8] sm:$0x3f] %v545_v30 }
 0x155 PF: > { %s23_s24 = sadd.s32 1, %s880_s24   ;;  %s1337_s20 = smov %s864_s21 }
 0x156   : > { %p20_p6 = scmp.ge.s32.totalorder %s23_s24, 4   ;;  %s1338_s21 = smov %s868_s0 }
 0x157   : > { %s1339_s0 = smov %s965_s5  ;;  %s1340_s22 = smov %s876_s23 }
 0x158   : > { %s1341_s23 = smov %s1343_s26  ;;  %22 = sbr.rel (!%p20_p6) target bundleno = 19 (0x13), region = 79 }
 0x15f   :  { %579 = vsyncpa [#allocation5], 1 }
 0x160   :  { %581 = vsyncpa [#allocation5 + $0x1], 1 }

</bundles_post_ra>
